<compile_context>
chip_gen: v6e
topology: v6e:2x2x1
jax: 0.10.0
libtpu: 0.0.40
codegen_flags: <defaults>
</compile_context>

<pallas_src>
import jax
import jax.numpy as jnp
from jax.experimental import pallas as pl
from jax.experimental.pallas import tpu as pltpu


# ---------------------------------------------------------------------------
# Kernels
# ---------------------------------------------------------------------------

def _proj_single_kernel(e_ref, m_ref, s_ref, c_ref, o_ref):
    """Full-K single pass: o = (E @ M) * scale2 + bias2."""
    acc = jnp.dot(e_ref[...], m_ref[...], preferred_element_type=jnp.float32)
    o_ref[...] = (acc * s_ref[...] + c_ref[...]).astype(o_ref.dtype)


def _proj_reduce_f32_kernel(e_ref, m_ref, s_ref, c_ref, o_ref):
    """K-reduction grid, f32 output: accumulate directly into the resident
    output tile (no scratch), fused affine epilogue on the last k step."""
    k = pl.program_id(2)

    @pl.when(k == 0)
    def _():
        o_ref[...] = jnp.zeros_like(o_ref)

    o_ref[...] += jnp.dot(e_ref[...], m_ref[...],
                          preferred_element_type=jnp.float32)

    @pl.when(k == pl.num_programs(2) - 1)
    def _():
        o_ref[...] = o_ref[...] * s_ref[...] + c_ref[...]


def _proj_reduce_kernel(e_ref, m_ref, s_ref, c_ref, o_ref, acc_ref):
    """K-reduction grid, non-f32 output: f32 VMEM scratch accumulator."""
    k = pl.program_id(2)

    @pl.when(k == 0)
    def _():
        acc_ref[...] = jnp.zeros_like(acc_ref)

    acc_ref[...] += jnp.dot(e_ref[...], m_ref[...],
                            preferred_element_type=jnp.float32)

    @pl.when(k == pl.num_programs(2) - 1)
    def _():
        o_ref[...] = (acc_ref[...] * s_ref[...] + c_ref[...]).astype(o_ref.dtype)


# ---------------------------------------------------------------------------
# Tile selection helpers
# ---------------------------------------------------------------------------

def _divisor_tiles(dim, align, target):
    """Descending candidate tile sizes for `dim`: either the full extent
    (always legal for the (8,128) rule) or `align`-aligned divisors <= target."""
    cands = []
    if dim <= target:
        cands.append(dim)
    t = (min(target, dim) // align) * align
    while t >= align:
        if dim % t == 0 and t not in cands:
            cands.append(t)
        t -= align
    if not cands:
        cands.append(dim)  # ragged + large: fall back to full extent
    return cands


def _vmem_estimate(tm, tn, tk, e_bytes, m_bytes, o_bytes, need_scratch):
    est = 2 * tm * tk * e_bytes        # embeddings tile, double-buffered
    est += 2 * tk * tn * m_bytes       # M tile, double-buffered
    est += 2 * tm * tn * o_bytes       # output tile, double-buffered
    est += 2 * 2 * tn * 4              # scale2 / bias2 slabs
    if need_scratch:
        est += tm * tn * 4             # f32 accumulator
    return est


# ---------------------------------------------------------------------------
# Wrapper
# ---------------------------------------------------------------------------

def embedding_linear_projection(embeddings, M, b, scale_ratio, center_bias,
                                *, tm=None, tn=None, tk=None,
                                vmem_tile_budget_bytes=40 * 1024 * 1024):
    B, src_dim = embeddings.shape
    src_dim2, tgt_dim = M.shape
    assert src_dim == src_dim2

    out_dtype = embeddings.dtype
    e_bytes = embeddings.dtype.itemsize
    m_bytes = M.dtype.itemsize
    o_bytes = jnp.dtype(out_dtype).itemsize

    auto_tiles = (tm is None and tn is None and tk is None)

    # Candidate tiles: big tm first (maximize M reuse), full-K first (drop the
    # reduction axis), then the widest tn that fits the VMEM budget.
    tm_cands = _divisor_tiles(B, 8, 512) if tm is None else [tm]
    tn_cands = _divisor_tiles(tgt_dim, 128, 512) if tn is None else [tn]
    if tk is None:
        tk_cands = _divisor_tiles(src_dim, 128, 2048)
        if src_dim not in tk_cands:
            tk_cands = [src_dim] + tk_cands   # always try collapsing K first
    else:
        tk_cands = [tk]

    chosen = None
    for tm_ in tm_cands:
        for tk_ in tk_cands:
            for tn_ in tn_cands:
                need_scratch = (tk_ != src_dim) and (out_dtype != jnp.float32)
                if _vmem_estimate(tm_, tn_, tk_, e_bytes, m_bytes, o_bytes,
                                  need_scratch) <= vmem_tile_budget_bytes:
                    chosen = (tm_, tn_, tk_)
                    break
            if chosen is not None:
                break
        if chosen is not None:
            break
    if chosen is None:   # nothing fit the budget: take the smallest candidates
        chosen = (tm_cands[-1], tn_cands[-1], tk_cands[-1])
    tm, tn, tk = chosen

    # v7x has 2 TensorCores: make sure at least one parallel axis has >=2 blocks.
    if auto_tiles and (B // tm == 1) and (tgt_dim // tn == 1):
        if tn % 256 == 0:
            tn //= 2
        elif tm % 16 == 0:
            tm //= 2

    assert B % tm == 0 and tgt_dim % tn == 0 and src_dim % tk == 0

    # Fold the epilogue: (x/N + b) * s + c  ==  x * (s/N) + (b*s + c)
    s_f32 = scale_ratio.astype(jnp.float32)
    scale2 = (s_f32 / float(tgt_dim)).reshape(1, tgt_dim)
    bias2 = (b.astype(jnp.float32) * s_f32
             + center_bias.astype(jnp.float32)).reshape(1, tgt_dim)

    need_scratch = (tk != src_dim) and (out_dtype != jnp.float32)
    est = _vmem_estimate(tm, tn, tk, e_bytes, m_bytes, o_bytes, need_scratch)
    # Explicit scoped-VMEM limit: above the 16 MiB v5e default, headroom under
    # v7x's 64 MiB physical VMEM.
    vmem_limit = min(56 * 1024 * 1024, max(32 * 1024 * 1024, int(est * 1.25)))

    single_pass = (tk == src_dim)

    if single_pass:
        grid = (B // tm, tgt_dim // tn)
        return pl.pallas_call(
            _proj_single_kernel,
            out_shape=jax.ShapeDtypeStruct((B, tgt_dim), out_dtype),
            grid_spec=pltpu.PrefetchScalarGridSpec(
                num_scalar_prefetch=0,
                grid=grid,
                in_specs=[
                    pl.BlockSpec((tm, src_dim), lambda i, j: (i, 0)),  # embeddings
                    pl.BlockSpec((src_dim, tn), lambda i, j: (0, j)),  # M
                    pl.BlockSpec((1, tn), lambda i, j: (0, j)),        # scale2
                    pl.BlockSpec((1, tn), lambda i, j: (0, j)),        # bias2
                ],
                out_specs=pl.BlockSpec((tm, tn), lambda i, j: (i, j)),
            ),
            compiler_params=pltpu.CompilerParams(
                dimension_semantics=("parallel", "parallel"),
                vmem_limit_bytes=vmem_limit,
            ),
        )(embeddings, M, scale2, bias2)

    # K-tiled path
    grid = (B // tm, tgt_dim // tn, src_dim // tk)
    if out_dtype == jnp.float32:
        kernel = _proj_reduce_f32_kernel
        scratch = []
    else:
        kernel = _proj_reduce_kernel
        scratch = [pltpu.VMEM((tm, tn), jnp.float32)]

    return pl.pallas_call(
        kernel,
        out_shape=jax.ShapeDtypeStruct((B, tgt_dim), out_dtype),
        grid_spec=pltpu.PrefetchScalarGridSpec(
            num_scalar_prefetch=0,
            grid=grid,
            in_specs=[
                pl.BlockSpec((tm, tk), lambda i, j, k: (i, k)),   # embeddings
                pl.BlockSpec((tk, tn), lambda i, j, k: (k, j)),   # M
                pl.BlockSpec((1, tn), lambda i, j, k: (0, j)),    # scale2
                pl.BlockSpec((1, tn), lambda i, j, k: (0, j)),    # bias2
            ],
            out_specs=pl.BlockSpec((tm, tn), lambda i, j, k: (i, j)),
            scratch_shapes=scratch,
        ),
        compiler_params=pltpu.CompilerParams(
            dimension_semantics=("parallel", "parallel", "arbitrary"),
            vmem_limit_bytes=vmem_limit,
        ),
    )(embeddings, M, scale2, bias2)


# ---------------------------------------------------------------------------
# Reference + self-test
# ---------------------------------------------------------------------------

def reference(embeddings, M, b, scale_ratio, center_bias):
    x = embeddings @ M / M.shape[1]
    x = x + b
    x = x * scale_ratio
    x = x + center_bias
    return x


if __name__ == "__main__":
    batch, src_dim, tgt_dim = 8, 256, 128

    key = jax.random.PRNGKey(0)
    k_emb, k_m, k_b, k_s, k_c = jax.random.split(key, 5)

    embeddings = jax.random.normal(k_emb, (batch, src_dim), dtype=jnp.float32)

    # Module __init__ parameters: M = randn, b = zeros, scale = ones, center = zeros
    M = jax.random.normal(k_m, (src_dim, tgt_dim), dtype=jnp.float32)
    b0 = jnp.zeros((tgt_dim,), dtype=jnp.float32)
    s0 = jnp.ones((tgt_dim,), dtype=jnp.float32)
    c0 = jnp.zeros((tgt_dim,), dtype=jnp.float32)

    out = embedding_linear_projection(embeddings, M, b0, s0, c0)
    out = jax.block_until_ready(out)
    ref = reference(embeddings, M, b0, s0, c0)
    assert out.shape == (batch, tgt_dim)
    assert jnp.allclose(out, ref, atol=1e-4, rtol=1e-4), "mismatch (init params)"

    # Non-trivial ("trained") parameters: exercises the folded epilogue.
    b1 = 0.1 * jax.random.normal(k_b, (tgt_dim,), dtype=jnp.float32)
    s1 = 1.0 + 0.1 * jax.random.normal(k_s, (tgt_dim,), dtype=jnp.float32)
    c1 = 0.1 * jax.random.normal(k_c, (tgt_dim,), dtype=jnp.float32)

    out1 = embedding_linear_projection(embeddings, M, b1, s1, c1)
    out1 = jax.block_until_ready(out1)
    ref1 = reference(embeddings, M, b1, s1, c1)
    assert jnp.allclose(out1, ref1, atol=1e-4, rtol=1e-4), "mismatch (trained params)"

    # Force the K-tiled reduction path as well (tk < src_dim).
    out2 = embedding_linear_projection(embeddings, M, b1, s1, c1, tm=8, tn=128, tk=128)
    out2 = jax.block_until_ready(out2)
    assert jnp.allclose(out2, ref1, atol=1e-4, rtol=1e-4), "mismatch (K-tiled path)"

    print("KERNEL_OK")
</pallas_src>

<mosaic_0001>
module attributes {stable_mosaic.version = 11 : i64} {
  func.func @_proj_single_kernel(%arg0: i32, %arg1: i32, %arg2: memref<8x256xf32, #tpu.memory_space<vmem>>, %arg3: memref<256x128xf32, #tpu.memory_space<vmem>>, %arg4: memref<1x128xf32, #tpu.memory_space<vmem>>, %arg5: memref<1x128xf32, #tpu.memory_space<vmem>>, %arg6: memref<8x128xf32, #tpu.memory_space<vmem>>) attributes {dimension_semantics = [#tpu.dimension_semantics<parallel>, #tpu.dimension_semantics<parallel>], iteration_bounds = array<i64: 1, 1>, scalar_prefetch = 0 : i64, scratch_operands = 0 : i64, tpu.core_type = #tpu.core_type<tc>, window_params = [{transform_indices = @transform_0, window_bounds = array<i64: 8, 256>}, {transform_indices = @transform_1, window_bounds = array<i64: 256, 128>}, {transform_indices = @transform_2, window_bounds = array<i64: 1, 128>}, {transform_indices = @transform_3, window_bounds = array<i64: 1, 128>}, {transform_indices = @transform_4, window_bounds = array<i64: 8, 128>}]} {
    %c0 = arith.constant 0 : index
    %c0_0 = arith.constant 0 : index
    %0 = vector.load %arg2[%c0, %c0_0] : memref<8x256xf32, #tpu.memory_space<vmem>>, vector<8x256xf32>
    %c0_1 = arith.constant 0 : index
    %c0_2 = arith.constant 0 : index
    %1 = vector.load %arg3[%c0_1, %c0_2] : memref<256x128xf32, #tpu.memory_space<vmem>>, vector<256x128xf32>
    %cst = arith.constant dense<0.000000e+00> : vector<8x128xf32>
    %2 = tpu.matmul %0, %1, %cst {dimension_numbers = #tpu.dot_dimension_numbers<[1], [0], [0], [1], [0, 0, 1, 1], [], []>} : vector<8x256xf32>, vector<256x128xf32>, vector<8x128xf32> -> vector<8x128xf32>
    %c0_3 = arith.constant 0 : index
    %c0_4 = arith.constant 0 : index
    %3 = vector.load %arg4[%c0_3, %c0_4] : memref<1x128xf32, #tpu.memory_space<vmem>>, vector<1x128xf32>
    %4 = vector.broadcast %3 : vector<1x128xf32> to vector<8x128xf32>
    %5 = arith.mulf %2, %4 : vector<8x128xf32>
    %c0_5 = arith.constant 0 : index
    %c0_6 = arith.constant 0 : index
    %6 = vector.load %arg5[%c0_5, %c0_6] : memref<1x128xf32, #tpu.memory_space<vmem>>, vector<1x128xf32>
    %7 = vector.broadcast %6 : vector<1x128xf32> to vector<8x128xf32>
    %8 = arith.addf %5, %7 : vector<8x128xf32>
    %c0_7 = arith.constant 0 : index
    %c0_8 = arith.constant 0 : index
    %9 = vector.load %arg6[%c0_7, %c0_8] : memref<8x128xf32, #tpu.memory_space<vmem>>, vector<8x128xf32>
    tpu.vector_store %arg6[%c0_7, %c0_8], %8 {strides = array<i32>} : memref<8x128xf32, #tpu.memory_space<vmem>>, vector<8x128xf32>,
    return
  }
  func.func @transform_0(%arg0: i32, %arg1: i32) -> (i32, i32) {
    %c0_i32 = arith.constant 0 : i32
    %c0_i32_0 = arith.constant 0 : i32
    return %arg0, %c0_i32 : i32, i32
  }
  func.func @transform_1(%arg0: i32, %arg1: i32) -> (i32, i32) {
    %c0_i32 = arith.constant 0 : i32
    %c0_i32_0 = arith.constant 0 : i32
    return %c0_i32, %arg1 : i32, i32
  }
  func.func @transform_2(%arg0: i32, %arg1: i32) -> (i32, i32) {
    %c0_i32 = arith.constant 0 : i32
    %c0_i32_0 = arith.constant 0 : i32
    return %c0_i32, %arg1 : i32, i32
  }
  func.func @transform_3(%arg0: i32, %arg1: i32) -> (i32, i32) {
    %c0_i32 = arith.constant 0 : i32
    %c0_i32_0 = arith.constant 0 : i32
    return %c0_i32, %arg1 : i32, i32
  }
  func.func @transform_4(%arg0: i32, %arg1: i32) -> (i32, i32) {
    %c0_i32 = arith.constant 0 : i32
    return %arg0, %arg1 : i32, i32
  }
}

</mosaic_0001>

<bundles_post_ra>
// kernel: tpu_custom_call.1
= control target key start
LH: loop header
LB: loop body
LE: loop exit
PB: predicated region body
PF: predicated region fallthrough
CT: control target
= control target key end

     0   :  { %9 = vsyncpa [#allocation3], 0  ;;  %s334_s0 = inlined_call_operand.hbm [shape: f32[8,256], index: 0, kind: input, shape index: {}]   ;;  %s335_s1 = inlined_call_operand.hbm [shape: f32[256,128], index: 1, kind: input, shape index: {}]   ;;  %s336_s2 = inlined_call_operand.vmem [shape: f32[1,128], index: 2, kind: input, shape index: {}]   ;;  %s337_s3 = inlined_call_operand.vmem [shape: f32[1,128], index: 3, kind: input, shape index: {}]   ;;  %s338_s4 = inlined_call_operand.hbm [shape: f32[8,128], index: 4, kind: output, shape index: {}]  }
   0x1   :  { %10 = vsyncpa [#allocation6], 0 }
   0x2   :  { %11 = vsyncpa [#allocation4], 0  ;;  %s289_s15 = smov [#allocation2]   ;;  %s290_s17 = smov [#allocation5]  }
   0x3   :  { %s18_s16 = sshll.u32 %s289_s15, 4  ;;  %s27_s18 = sshll.u32 %s290_s17, 4  ;;  %s19_s16 = int_to_ptr.vmem [resolvable:$true] %s18_s16  ;;  %s28_s18 = int_to_ptr.vmem [resolvable:$true] %s27_s18 }
   0x4   :  { %s231_s19 = scalar_lea.vmem %s19_s16, 256  ;;  %p236_p1 = scmp.lt.s32.totalorder %s19_s16, %s19_s16 }
   0x5   :  { %p232_p0 = scmp.ne.s32.totalorder %s19_s16, %s231_s19  ;;  %p237_p2 = scmp.lt.s32.totalorder %s231_s19, %s231_s19 }
   0x7   :  { %p238_p3 = por %p237_p2, %p236_p1 }
   0x9   :  { %p239_p4 = pnand %p238_p3, %p232_p0 }
   0xb   :  { %242 = shalt.err (!%p239_p4)
}
   0xc   :  { %21 = dma.hbm_to_vmem [thread:$0]  %s334_s0, 256, %s19_s16, [#allocation3]  }
   0xd   :  { %s251_s22 = scalar_lea.vmem %s28_s18, 4096  ;;  %p256_p6 = scmp.lt.s32.totalorder %s28_s18, %s28_s18 }
   0xe   :  { %p252_p5 = scmp.ne.s32.totalorder %s28_s18, %s251_s22  ;;  %p257_p7 = scmp.lt.s32.totalorder %s251_s22, %s251_s22 }
  0x10   :  { %p258_p8 = por %p257_p7, %p256_p6 }
  0x12   :  { %p259_p9 = pnand %p258_p8, %p252_p5 }
  0x14   :  { %262 = shalt.err (!%p259_p9)
}
  0x15   :  { %s291_s23 = smov 128   ;;  %s292_s24 = smov 8  }
  0x16   :  { %33 = dma.hbm_to_vmem [thread:$0]  %s335_s1, 4096, %s28_s18, [#allocation6], %s291_s23, %s291_s23, %s292_s24  }
  0x17   :  { %283 = dma.done.wait [#allocation3], 256  }
  0x18   :  { %284 = vsyncadd [#allocation3], 4294967040 }
  0x19   :  { %285 = dma.done.wait [#allocation6], 4096  }
  0x1a   :  { %286 = vsyncadd [#allocation6], 4294963200  ;;  %v77_v0 = vld [vmem:[#allocation5 + $0xf8] sm:$0xff]  ;;  %v76_v2 = vld [vmem:[#allocation5 + $0xf0] sm:$0xff]  ;;  %s293_s29 = smov [#allocation7]  }
  0x1b   :  { %v61_v1 = vld [vmem:[#allocation5 + $0x78] sm:$0xff]  ;;  %183 = vmatprep.subr.mxu0 %v77_v0  ;;  %v60_v3 = vld [vmem:[#allocation5 + $0x70] sm:$0xff]  ;;  %v75_v4 = vld [vmem:[#allocation5 + $0xe8] sm:$0xff]  ;;  %s171_s30 = sshll.u32 %s293_s29, 4  ;;  %s172_s30 = int_to_ptr.vmem [resolvable:$true] %s171_s30 }
  0x1c   :  { %184 = vmatpush3.msra.mxu0 %v61_v1  ;;  %v59_v5 = vld [vmem:[#allocation5 + $0x68] sm:$0xff]  ;;  %v74_v6 = vld [vmem:[#allocation5 + $0xe0] sm:$0xff]  ;;  %v73_v8 = vld [vmem:[#allocation5 + $0xd8] sm:$0xff]  ;;  %s263_s5 = scalar_lea.vmem %s172_s30, 128  ;;  %p268_p11 = scmp.lt.s32.totalorder %s172_s30, %s172_s30 }
  0x1d   :  { %185 = vmatprep.subr.mxu0 %v76_v2  ;;  %v58_v7 = vld [vmem:[#allocation5 + $0x60] sm:$0xff]  ;;  %v57_v9 = vld [vmem:[#allocation5 + $0x58] sm:$0xff]  ;;  %v72_v10 = vld [vmem:[#allocation5 + $0xd0] sm:$0xff]  ;;  %p264_p10 = scmp.ne.s32.totalorder %s172_s30, %s263_s5  ;;  %p269_p12 = scmp.lt.s32.totalorder %s263_s5, %s263_s5 }
  0x1e   :  { %186 = vmatpush3.msra.mxu0 %v60_v3  ;;  %v56_v11 = vld [vmem:[#allocation5 + $0x50] sm:$0xff]  ;;  %v71_v12 = vld [vmem:[#allocation5 + $0xc8] sm:$0xff]  ;;  %v45_v13 = vld [vmem:[#allocation2 + $0x8] sm:$0xff] }
  0x1f   :  { %187 = vmatprep.subr.mxu0 %v75_v4  ;;  %v55_v14 = vld [vmem:[#allocation5 + $0x48] sm:$0xff]  ;;  %142 = vmatprep.mubr.f32.mxu0 %v45_v13  ;;  %v70_v15 = vld [vmem:[#allocation5 + $0xc0] sm:$0xff]  ;;  %v69_v17 = vld [vmem:[#allocation5 + $0xb8] sm:$0xff]  ;;  %p270_p13 = por %p269_p12, %p268_p11 }
  0x20   :  { %188 = vmatpush3.msra.mxu0 %v59_v5  ;;  %v54_v16 = vld [vmem:[#allocation5 + $0x40] sm:$0xff]  ;;  %v53_v18 = vld [vmem:[#allocation5 + $0x38] sm:$0xff]  ;;  %v68_v19 = vld [vmem:[#allocation5 + $0xb0] sm:$0xff] }
  0x21   :  { %189 = vmatprep.subr.mxu0 %v74_v6  ;;  %v52_v20 = vld [vmem:[#allocation5 + $0x30] sm:$0xff]  ;;  %v67_v21 = vld [vmem:[#allocation5 + $0xa8] sm:$0xff]  ;;  %v66_v23 = vld [vmem:[#allocation5 + $0xa0] sm:$0xff]  ;;  %p271_p0 = pnand %p270_p13, %p264_p10 }
  0x22   :  { %190 = vmatpush3.msra.mxu0 %v58_v7  ;;  %v51_v22 = vld [vmem:[#allocation5 + $0x28] sm:$0xff]  ;;  %v50_v24 = vld [vmem:[#allocation5 + $0x20] sm:$0xff]  ;;  %v65_v25 = vld [vmem:[#allocation5 + $0x98] sm:$0xff] }
  0x23   :  { %191 = vmatprep.subr.mxu0 %v73_v8  ;;  %v49_v26 = vld [vmem:[#allocation5 + $0x18] sm:$0xff]  ;;  %v64_v27 = vld [vmem:[#allocation5 + $0x90] sm:$0xff]  ;;  %v63_v29 = vld [vmem:[#allocation5 + $0x88] sm:$0xff] }
  0x24   :  { %192 = vmatpush3.msra.mxu0 %v57_v9  ;;  %v48_v28 = vld [vmem:[#allocation5 + $0x10] sm:$0xff]  ;;  %v47_v30 = vld [vmem:[#allocation5 + $0x8] sm:$0xff]  ;;  %v62_v31 = vld [vmem:[#allocation5 + $0x80] sm:$0xff] }
  0x25   :  { %193 = vmatprep.subr.mxu0 %v72_v10  ;;  %v46_v32 = vld [vmem:[#allocation5] sm:$0xff]  ;;  %v44_v33 = vld [vmem:[#allocation2] sm:$0xff] }
  0x26   :  { %194 = vmatpush3.msra.mxu0 %v56_v11  ;;  %v181_v36 = vld [vmem:[%s336_s2] ss:$0 sm:$0xff] }
  0x27   :  { %195 = vmatprep.subr.mxu0 %v71_v12  ;;  %v182_v38 = vld [vmem:[%s337_s3] ss:$0 sm:$0xff] }
  0x28   :  { %196 = vmatpush3.msra.mxu0 %v55_v14 }
  0x29   :  { %197 = vmatprep.subr.mxu0 %v70_v15 }
  0x2a   :  { %198 = vmatpush3.msra.mxu0 %v54_v16 }
  0x2b   :  { %199 = vmatprep.subr.mxu0 %v69_v17 }
  0x2c   :  { %200 = vmatpush3.msra.mxu0 %v53_v18 }
  0x2d   :  { %201 = vmatprep.subr.mxu0 %v68_v19 }
  0x2e   :  { %202 = vmatpush3.msra.mxu0 %v52_v20 }
  0x2f   :  { %203 = vmatprep.subr.mxu0 %v67_v21 }
  0x30   :  { %204 = vmatpush3.msra.mxu0 %v51_v22 }
  0x31   :  { %205 = vmatprep.subr.mxu0 %v66_v23 }
  0x32   :  { %206 = vmatpush3.msra.mxu0 %v50_v24 }
  0x33   :  { %207 = vmatprep.subr.mxu0 %v65_v25 }
  0x34   :  { %208 = vmatpush3.msra.mxu0 %v49_v26 }
  0x35   :  { %209 = vmatprep.subr.mxu0 %v64_v27 }
  0x36   :  { %210 = vmatpush3.msra.mxu0 %v48_v28 }
  0x37   :  { %211 = vmatprep.subr.mxu0 %v63_v29 }
  0x38   :  { %212 = vmatpush3.msra.mxu0 %v47_v30 }
  0x39   :  { %213 = vmatprep.subr.mxu0 %v62_v31 }
  0x3a   :  { %214 = vmatpush3.msra.mxu0 %v46_v32 }
  0x3b   :  { %143 = vmatmul.mubr.f32.vlgmr.msra.gmra.mxu0 %v44_v33 }
  0xfb   :  { %v215_v34 = vpop.f32.mrf.mxu0 }
  0xfd   :  { %v216_v35 = vpop.f32.mrf.mxu0 }
  0xfe   :  { %v217_v37 = vadd.f32 %v216_v35, %v215_v34 }
 0x100   :  { %v155_v39 = vmul.f32 %v217_v37, %v181_v36 }
 0x102   :  { %v163_v40 = vadd.f32 %v182_v38, %v155_v39 }
 0x104   :  { %164 = vst [vmem:[#allocation7] sm:$0xff] %v163_v40 }
 0x105   :  { %274 = shalt.err (!%p271_p0)
}
 0x106   :  { %174 = dma.vmem_to_hbm [thread:$0]  %s172_s30, 128, %s338_s4, [#allocation4]  }
 0x107   :  { %287 = dma.done.wait [#allocation4], 128  }
 0x108   :  { %288 = vsyncadd [#allocation4], 4294967168 }
 0x109   :  { %178 = vsyncpa [#allocation3], 1 }
 0x10a   :  { %179 = vsyncpa [#allocation6], 1 }
 0x10b   :  { %180 = vsyncpa [#allocation4], 1 }

</bundles_post_ra>
